<compile_context>
chip_gen: v7x
topology: tpu7x:2x2x1
jax: 0.10.0
libtpu: 0.0.40
codegen_flags: <defaults>
</compile_context>

<pallas_src>
import functools

import jax
import jax.numpy as jnp
from jax.experimental import pallas as pl
from jax.experimental.pallas import tpu as pltpu


def _round_up(n, m):
    return ((n + m - 1) // m) * m


def _make_kernel(num_siamese_layers: int, num_shared_layers: int):
    """Builds a Pallas kernel body for a fixed layer count (>= 1 each)."""

    def kernel(*refs):
        # refs layout:
        #   x1_blk, x2_blk,
        #   [W_si, b_si] * num_siamese_layers,
        #   W_sh0_top, W_sh0_bot, b_sh0,
        #   [W_sh, b_sh] * (num_shared_layers - 1),
        #   w_out_row (1, 2H), b_out (1, 1),
        #   out_ref (tb, 128)
        out_ref = refs[-1]
        refs = refs[:-1]
        idx = 0

        x1 = refs[idx][...]
        x2 = refs[idx + 1][...]
        idx += 2
        tb = x1.shape[0]

        # (1) Stack the pair onto the batch/sublane axis: one matmul per
        # trunk layer services both branches.
        x12 = jnp.concatenate([x1, x2], axis=0)  # (2*tb, D)
        for _ in range(num_siamese_layers):
            w = refs[idx][...]
            b = refs[idx + 1][...]
            idx += 2
            x12 = jnp.maximum(
                jnp.dot(x12, w, preferred_element_type=jnp.float32) + b, 0.0)

        # Contiguous sublane slices (tb is a multiple of 8).
        h1 = x12[:tb, :]
        h2 = x12[tb:, :]

        # (2) First shared layer via split weights — equivalent to
        # Linear(concat([h1, h2], axis=1)) without a lane-axis concat.
        w_top = refs[idx][...]
        w_bot = refs[idx + 1][...]
        b0 = refs[idx + 2][...]
        idx += 3
        h = jnp.dot(h1, w_top, preferred_element_type=jnp.float32)
        h = h + jnp.dot(h2, w_bot, preferred_element_type=jnp.float32)
        h = jnp.maximum(h + b0, 0.0)

        # Remaining shared layers: (Linear 2H->2H, ReLU).
        for _ in range(num_shared_layers - 1):
            w = refs[idx][...]
            b = refs[idx + 1][...]
            idx += 2
            h = jnp.maximum(
                jnp.dot(h, w, preferred_element_type=jnp.float32) + b, 0.0)

        # (3) Final Linear 2H -> 1 as VPU multiply + lane reduction, stored
        # lane-dense (broadcast across 128 lanes; wrapper keeps column 0).
        w_row = refs[idx][...]        # (1, 2H)
        b_out = refs[idx + 1][...]    # (1, 1)
        logit = jnp.sum(h * w_row, axis=-1, keepdims=True) + b_out  # (tb, 1)
        out_ref[...] = jnp.broadcast_to(logit, out_ref.shape)

    return kernel


def init_params(key, input_dim, hidden_dim, num_siamese_layers,
                num_shared_layers):
    """Deterministic synthetic parameter init (shapes match nn.Linear layers)."""
    params = []
    for i in range(num_siamese_layers):
        in_dim = input_dim if i == 0 else hidden_dim
        key, kw, kb = jax.random.split(key, 3)
        scale = 1.0 / jnp.sqrt(jnp.float32(in_dim))
        w = jax.random.uniform(kw, (in_dim, hidden_dim), jnp.float32,
                               -scale, scale)
        b = jax.random.uniform(kb, (1, hidden_dim), jnp.float32, -scale, scale)
        params += [w, b]
    two_h = 2 * hidden_dim
    for _ in range(num_shared_layers):
        key, kw, kb = jax.random.split(key, 3)
        scale = 1.0 / jnp.sqrt(jnp.float32(two_h))
        w = jax.random.uniform(kw, (two_h, two_h), jnp.float32, -scale, scale)
        b = jax.random.uniform(kb, (1, two_h), jnp.float32, -scale, scale)
        params += [w, b]
    key, kw, kb = jax.random.split(key, 3)
    scale = 1.0 / jnp.sqrt(jnp.float32(two_h))
    w = jax.random.uniform(kw, (two_h, 1), jnp.float32, -scale, scale)
    b = jax.random.uniform(kb, (1, 1), jnp.float32, -scale, scale)
    params += [w, b]
    return params


@functools.partial(jax.jit, static_argnums=(2, 3))
def siamese_forward(x, params, num_siamese_layers, num_shared_layers):
    """x: (B, 2, input_dim) float32 -> (B, 1) float32."""
    assert num_siamese_layers >= 1 and num_shared_layers >= 1
    B = x.shape[0]
    D = x.shape[2]
    H = params[0].shape[1]

    # (4) Batch tiling: one parallel grid axis over row blocks; weights stay
    # resident in VMEM (constant index_map). Large blocks amortize the
    # ~0.35 us/step pipeline overhead; toy sizes collapse to a single step.
    tb = min(512, _round_up(B, 8))
    Bp = _round_up(B, tb)
    nb = Bp // tb

    x1 = x[:, 0, :]
    x2 = x[:, 1, :]
    if Bp != B:
        pad = ((0, Bp - B), (0, 0))
        x1 = jnp.pad(x1, pad)
        x2 = jnp.pad(x2, pad)

    # Re-pack params for the kernel: split the first shared-layer weight so
    # the kernel never lane-concatenates, and pass the final weight as a row.
    idx = 0
    kparams = []
    for _ in range(num_siamese_layers):
        kparams += [params[idx], params[idx + 1]]
        idx += 2
    w_sh0, b_sh0 = params[idx], params[idx + 1]
    idx += 2
    kparams += [w_sh0[:H, :], w_sh0[H:, :], b_sh0]
    for _ in range(num_shared_layers - 1):
        kparams += [params[idx], params[idx + 1]]
        idx += 2
    w_out, b_out = params[idx], params[idx + 1]
    kparams += [w_out.T, b_out]          # (1, 2H), (1, 1)

    inputs = [x1, x2] + kparams

    in_specs = [pl.BlockSpec((tb, D), lambda i: (i, 0)),
                pl.BlockSpec((tb, D), lambda i: (i, 0))]
    for p in kparams:
        # Full-array blocks, same block index every step -> weights resident.
        in_specs.append(pl.BlockSpec(p.shape, lambda i: (0, 0)))
    # Lane-dense output slab; column 0 holds the logit, wrapper slices it.
    out_spec = pl.BlockSpec((tb, 128), lambda i: (i, 0))

    kernel = _make_kernel(num_siamese_layers, num_shared_layers)
    out_padded = pl.pallas_call(
        kernel,
        out_shape=jax.ShapeDtypeStruct((Bp, 128), jnp.float32),
        grid=(nb,),
        in_specs=in_specs,
        out_specs=out_spec,
        compiler_params=pltpu.CompilerParams(
            dimension_semantics=("parallel",)),
    )(*inputs)
    return out_padded[:B, :1]


def reference_forward(x, params, num_siamese_layers, num_shared_layers):
    """Pure-JAX reference mirroring the PyTorch module."""
    x1, x2 = x[:, 0, :], x[:, 1, :]
    idx = 0
    for _ in range(num_siamese_layers):
        w, b = params[idx], params[idx + 1]
        idx += 2
        x1 = jnp.maximum(x1 @ w + b, 0.0)
        x2 = jnp.maximum(x2 @ w + b, 0.0)
    h = jnp.concatenate([x1, x2], axis=1)
    for _ in range(num_shared_layers):
        w, b = params[idx], params[idx + 1]
        idx += 2
        h = jnp.maximum(h @ w + b, 0.0)
    w, b = params[idx], params[idx + 1]
    return h @ w + b


if __name__ == "__main__":
    # Small shapes consistent with the module (penguin-like feature dim).
    batch = 8
    input_dim = 4
    hidden_dim = 32
    num_siamese_layers = 2
    num_shared_layers = 2

    key = jax.random.PRNGKey(0)
    key, kx = jax.random.split(key)
    x = jax.random.normal(kx, (batch, 2, input_dim), dtype=jnp.float32)

    params = init_params(key, input_dim, hidden_dim, num_siamese_layers,
                         num_shared_layers)

    out = siamese_forward(x, params, num_siamese_layers, num_shared_layers)
    out = jax.block_until_ready(out)

    ref = reference_forward(x, params, num_siamese_layers, num_shared_layers)
    assert out.shape == (batch, 1), out.shape
    assert jnp.allclose(out, ref, atol=1e-5, rtol=1e-5), (out, ref)

    print("KERNEL_OK")
</pallas_src>

<mosaic_0001>
module attributes {stable_mosaic.version = 11 : i64} {
  func.func @kernel(%arg0: i32, %arg1: memref<8x4xf32, #tpu.memory_space<vmem>>, %arg2: memref<8x4xf32, #tpu.memory_space<vmem>>, %arg3: memref<4x32xf32, #tpu.memory_space<vmem>>, %arg4: memref<1x32xf32, #tpu.memory_space<vmem>>, %arg5: memref<32x32xf32, #tpu.memory_space<vmem>>, %arg6: memref<1x32xf32, #tpu.memory_space<vmem>>, %arg7: memref<32x64xf32, #tpu.memory_space<vmem>>, %arg8: memref<32x64xf32, #tpu.memory_space<vmem>>, %arg9: memref<1x64xf32, #tpu.memory_space<vmem>>, %arg10: memref<64x64xf32, #tpu.memory_space<vmem>>, %arg11: memref<1x64xf32, #tpu.memory_space<vmem>>, %arg12: memref<1x64xf32, #tpu.memory_space<vmem>>, %arg13: memref<1x1xf32, #tpu.memory_space<vmem>>, %arg14: memref<8x128xf32, #tpu.memory_space<vmem>>) attributes {dimension_semantics = [#tpu.dimension_semantics<parallel>], iteration_bounds = array<i64: 1>, scalar_prefetch = 0 : i64, scratch_operands = 0 : i64, tpu.core_type = #tpu.core_type<tc>, window_params = [{transform_indices = @transform_0, window_bounds = array<i64: 8, 4>}, {transform_indices = @transform_1, window_bounds = array<i64: 8, 4>}, {pipeline_mode = #tpu.pipeline_mode<synchronous>, transform_indices = @transform_2, window_bounds = array<i64: 4, 32>}, {pipeline_mode = #tpu.pipeline_mode<synchronous>, transform_indices = @transform_3, window_bounds = array<i64: 1, 32>}, {pipeline_mode = #tpu.pipeline_mode<synchronous>, transform_indices = @transform_4, window_bounds = array<i64: 32, 32>}, {pipeline_mode = #tpu.pipeline_mode<synchronous>, transform_indices = @transform_5, window_bounds = array<i64: 1, 32>}, {pipeline_mode = #tpu.pipeline_mode<synchronous>, transform_indices = @transform_6, window_bounds = array<i64: 32, 64>}, {pipeline_mode = #tpu.pipeline_mode<synchronous>, transform_indices = @transform_7, window_bounds = array<i64: 32, 64>}, {pipeline_mode = #tpu.pipeline_mode<synchronous>, transform_indices = @transform_8, window_bounds = array<i64: 1, 64>}, {pipeline_mode = #tpu.pipeline_mode<synchronous>, transform_indices = @transform_9, window_bounds = array<i64: 64, 64>}, {pipeline_mode = #tpu.pipeline_mode<synchronous>, transform_indices = @transform_10, window_bounds = array<i64: 1, 64>}, {pipeline_mode = #tpu.pipeline_mode<synchronous>, transform_indices = @transform_11, window_bounds = array<i64: 1, 64>}, {pipeline_mode = #tpu.pipeline_mode<synchronous>, transform_indices = @transform_12, window_bounds = array<i64: 1, 1>}, {transform_indices = @transform_13, window_bounds = array<i64: 8, 128>}]} {
    %c0 = arith.constant 0 : index
    %c0_0 = arith.constant 0 : index
    %0 = vector.load %arg1[%c0, %c0_0] : memref<8x4xf32, #tpu.memory_space<vmem>>, vector<8x4xf32>
    %c0_1 = arith.constant 0 : index
    %c0_2 = arith.constant 0 : index
    %1 = vector.load %arg2[%c0_1, %c0_2] : memref<8x4xf32, #tpu.memory_space<vmem>>, vector<8x4xf32>
    %2 = tpu.concatenate %0, %1 in 0 : vector<8x4xf32>, vector<8x4xf32> -> vector<16x4xf32>
    %c0_3 = arith.constant 0 : index
    %c0_4 = arith.constant 0 : index
    %3 = vector.load %arg3[%c0_3, %c0_4] : memref<4x32xf32, #tpu.memory_space<vmem>>, vector<4x32xf32>
    %c0_5 = arith.constant 0 : index
    %c0_6 = arith.constant 0 : index
    %4 = vector.load %arg4[%c0_5, %c0_6] : memref<1x32xf32, #tpu.memory_space<vmem>>, vector<1x32xf32>
    %cst = arith.constant dense<0.000000e+00> : vector<16x32xf32>
    %5 = tpu.matmul %2, %3, %cst {dimension_numbers = #tpu.dot_dimension_numbers<[1], [0], [0], [1], [0, 0, 1, 1], [], []>} : vector<16x4xf32>, vector<4x32xf32>, vector<16x32xf32> -> vector<16x32xf32>
    %6 = vector.broadcast %4 : vector<1x32xf32> to vector<16x32xf32>
    %7 = arith.addf %5, %6 : vector<16x32xf32>
    %cst_7 = arith.constant 0.000000e+00 : f32
    %8 = vector.broadcast %cst_7 : f32 to vector<16x32xf32>
    %9 = arith.maximumf %7, %8 : vector<16x32xf32>
    %c0_8 = arith.constant 0 : index
    %c0_9 = arith.constant 0 : index
    %10 = vector.load %arg5[%c0_8, %c0_9] : memref<32x32xf32, #tpu.memory_space<vmem>>, vector<32x32xf32>
    %c0_10 = arith.constant 0 : index
    %c0_11 = arith.constant 0 : index
    %11 = vector.load %arg6[%c0_10, %c0_11] : memref<1x32xf32, #tpu.memory_space<vmem>>, vector<1x32xf32>
    %cst_12 = arith.constant dense<0.000000e+00> : vector<16x32xf32>
    %12 = tpu.matmul %9, %10, %cst_12 {dimension_numbers = #tpu.dot_dimension_numbers<[1], [0], [0], [1], [0, 0, 1, 1], [], []>} : vector<16x32xf32>, vector<32x32xf32>, vector<16x32xf32> -> vector<16x32xf32>
    %13 = vector.broadcast %11 : vector<1x32xf32> to vector<16x32xf32>
    %14 = arith.addf %12, %13 : vector<16x32xf32>
    %cst_13 = arith.constant 0.000000e+00 : f32
    %15 = vector.broadcast %cst_13 : f32 to vector<16x32xf32>
    %16 = arith.maximumf %14, %15 : vector<16x32xf32>
    %17 = vector.extract_strided_slice %16 {offsets = [0, 0], sizes = [8, 32], strides = [1, 1]} : vector<16x32xf32> to vector<8x32xf32>
    %18 = vector.extract_strided_slice %16 {offsets = [8, 0], sizes = [8, 32], strides = [1, 1]} : vector<16x32xf32> to vector<8x32xf32>
    %c0_14 = arith.constant 0 : index
    %c0_15 = arith.constant 0 : index
    %19 = vector.load %arg7[%c0_14, %c0_15] : memref<32x64xf32, #tpu.memory_space<vmem>>, vector<32x64xf32>
    %c0_16 = arith.constant 0 : index
    %c0_17 = arith.constant 0 : index
    %20 = vector.load %arg8[%c0_16, %c0_17] : memref<32x64xf32, #tpu.memory_space<vmem>>, vector<32x64xf32>
    %c0_18 = arith.constant 0 : index
    %c0_19 = arith.constant 0 : index
    %21 = vector.load %arg9[%c0_18, %c0_19] : memref<1x64xf32, #tpu.memory_space<vmem>>, vector<1x64xf32>
    %cst_20 = arith.constant dense<0.000000e+00> : vector<8x64xf32>
    %22 = tpu.matmul %17, %19, %cst_20 {dimension_numbers = #tpu.dot_dimension_numbers<[1], [0], [0], [1], [0, 0, 1, 1], [], []>} : vector<8x32xf32>, vector<32x64xf32>, vector<8x64xf32> -> vector<8x64xf32>
    %cst_21 = arith.constant dense<0.000000e+00> : vector<8x64xf32>
    %23 = tpu.matmul %18, %20, %cst_21 {dimension_numbers = #tpu.dot_dimension_numbers<[1], [0], [0], [1], [0, 0, 1, 1], [], []>} : vector<8x32xf32>, vector<32x64xf32>, vector<8x64xf32> -> vector<8x64xf32>
    %24 = arith.addf %22, %23 : vector<8x64xf32>
    %25 = vector.broadcast %21 : vector<1x64xf32> to vector<8x64xf32>
    %26 = arith.addf %24, %25 : vector<8x64xf32>
    %cst_22 = arith.constant 0.000000e+00 : f32
    %27 = vector.broadcast %cst_22 : f32 to vector<8x64xf32>
    %28 = arith.maximumf %26, %27 : vector<8x64xf32>
    %c0_23 = arith.constant 0 : index
    %c0_24 = arith.constant 0 : index
    %29 = vector.load %arg10[%c0_23, %c0_24] : memref<64x64xf32, #tpu.memory_space<vmem>>, vector<64x64xf32>
    %c0_25 = arith.constant 0 : index
    %c0_26 = arith.constant 0 : index
    %30 = vector.load %arg11[%c0_25, %c0_26] : memref<1x64xf32, #tpu.memory_space<vmem>>, vector<1x64xf32>
    %cst_27 = arith.constant dense<0.000000e+00> : vector<8x64xf32>
    %31 = tpu.matmul %28, %29, %cst_27 {dimension_numbers = #tpu.dot_dimension_numbers<[1], [0], [0], [1], [0, 0, 1, 1], [], []>} : vector<8x64xf32>, vector<64x64xf32>, vector<8x64xf32> -> vector<8x64xf32>
    %32 = vector.broadcast %30 : vector<1x64xf32> to vector<8x64xf32>
    %33 = arith.addf %31, %32 : vector<8x64xf32>
    %cst_28 = arith.constant 0.000000e+00 : f32
    %34 = vector.broadcast %cst_28 : f32 to vector<8x64xf32>
    %35 = arith.maximumf %33, %34 : vector<8x64xf32>
    %c0_29 = arith.constant 0 : index
    %c0_30 = arith.constant 0 : index
    %36 = vector.load %arg12[%c0_29, %c0_30] : memref<1x64xf32, #tpu.memory_space<vmem>>, vector<1x64xf32>
    %c0_31 = arith.constant 0 : index
    %c0_32 = arith.constant 0 : index
    %37 = vector.load %arg13[%c0_31, %c0_32] : memref<1x1xf32, #tpu.memory_space<vmem>>, vector<1x1xf32>
    %38 = vector.broadcast %36 : vector<1x64xf32> to vector<8x64xf32>
    %39 = arith.mulf %35, %38 : vector<8x64xf32>
    %cst_33 = arith.constant dense<0.000000e+00> : vector<8xf32>
    %40 = vector.multi_reduction <add>, %39, %cst_33 [1] : vector<8x64xf32> to vector<8xf32>
    %41 = vector.shape_cast %40 : vector<8xf32> to vector<8x1xf32>
    %42 = vector.broadcast %37 : vector<1x1xf32> to vector<8x1xf32>
    %43 = arith.addf %41, %42 : vector<8x1xf32>
    %44 = vector.shape_cast %43 : vector<8x1xf32> to vector<8x1xf32>
    %45 = vector.broadcast %44 : vector<8x1xf32> to vector<8x128xf32>
    %c0_34 = arith.constant 0 : index
    %c0_35 = arith.constant 0 : index
    %46 = vector.load %arg14[%c0_34, %c0_35] : memref<8x128xf32, #tpu.memory_space<vmem>>, vector<8x128xf32>
    tpu.vector_store %arg14[%c0_34, %c0_35], %45 {strides = array<i32>} : memref<8x128xf32, #tpu.memory_space<vmem>>, vector<8x128xf32>,
    return
  }
  func.func @transform_0(%arg0: i32) -> (i32, i32) {
    %c0_i32 = arith.constant 0 : i32
    %c0_i32_0 = arith.constant 0 : i32
    return %arg0, %c0_i32 : i32, i32
  }
  func.func @transform_1(%arg0: i32) -> (i32, i32) {
    %c0_i32 = arith.constant 0 : i32
    %c0_i32_0 = arith.constant 0 : i32
    return %arg0, %c0_i32 : i32, i32
  }
  func.func @transform_2(%arg0: i32) -> (i32, i32) {
    %c0_i32 = arith.constant 0 : i32
    %c0_i32_0 = arith.constant 0 : i32
    %c0_i32_1 = arith.constant 0 : i32
    return %c0_i32, %c0_i32_0 : i32, i32
  }
  func.func @transform_3(%arg0: i32) -> (i32, i32) {
    %c0_i32 = arith.constant 0 : i32
    %c0_i32_0 = arith.constant 0 : i32
    %c0_i32_1 = arith.constant 0 : i32
    return %c0_i32, %c0_i32_0 : i32, i32
  }
  func.func @transform_4(%arg0: i32) -> (i32, i32) {
    %c0_i32 = arith.constant 0 : i32
    %c0_i32_0 = arith.constant 0 : i32
    %c0_i32_1 = arith.constant 0 : i32
    return %c0_i32, %c0_i32_0 : i32, i32
  }
  func.func @transform_5(%arg0: i32) -> (i32, i32) {
    %c0_i32 = arith.constant 0 : i32
    %c0_i32_0 = arith.constant 0 : i32
    %c0_i32_1 = arith.constant 0 : i32
    return %c0_i32, %c0_i32_0 : i32, i32
  }
  func.func @transform_6(%arg0: i32) -> (i32, i32) {
    %c0_i32 = arith.constant 0 : i32
    %c0_i32_0 = arith.constant 0 : i32
    %c0_i32_1 = arith.constant 0 : i32
    return %c0_i32, %c0_i32_0 : i32, i32
  }
  func.func @transform_7(%arg0: i32) -> (i32, i32) {
    %c0_i32 = arith.constant 0 : i32
    %c0_i32_0 = arith.constant 0 : i32
    %c0_i32_1 = arith.constant 0 : i32
    return %c0_i32, %c0_i32_0 : i32, i32
  }
  func.func @transform_8(%arg0: i32) -> (i32, i32) {
    %c0_i32 = arith.constant 0 : i32
    %c0_i32_0 = arith.constant 0 : i32
    %c0_i32_1 = arith.constant 0 : i32
    return %c0_i32, %c0_i32_0 : i32, i32
  }
  func.func @transform_9(%arg0: i32) -> (i32, i32) {
    %c0_i32 = arith.constant 0 : i32
    %c0_i32_0 = arith.constant 0 : i32
    %c0_i32_1 = arith.constant 0 : i32
    return %c0_i32, %c0_i32_0 : i32, i32
  }
  func.func @transform_10(%arg0: i32) -> (i32, i32) {
    %c0_i32 = arith.constant 0 : i32
    %c0_i32_0 = arith.constant 0 : i32
    %c0_i32_1 = arith.constant 0 : i32
    return %c0_i32, %c0_i32_0 : i32, i32
  }
  func.func @transform_11(%arg0: i32) -> (i32, i32) {
    %c0_i32 = arith.constant 0 : i32
    %c0_i32_0 = arith.constant 0 : i32
    %c0_i32_1 = arith.constant 0 : i32
    return %c0_i32, %c0_i32_0 : i32, i32
  }
  func.func @transform_12(%arg0: i32) -> (i32, i32) {
    %c0_i32 = arith.constant 0 : i32
    %c0_i32_0 = arith.constant 0 : i32
    %c0_i32_1 = arith.constant 0 : i32
    return %c0_i32, %c0_i32_0 : i32, i32
  }
  func.func @transform_13(%arg0: i32) -> (i32, i32) {
    %c0_i32 = arith.constant 0 : i32
    %c0_i32_0 = arith.constant 0 : i32
    return %arg0, %c0_i32 : i32, i32
  }
}

</mosaic_0001>

<bundles_post_ra>
// kernel: siamese_forward.1
= control target key start
LH: loop header
LB: loop body
LE: loop exit
PB: predicated region body
PF: predicated region fallthrough
CT: control target
= control target key end

     0   :  { %vm63_vm0 = vcmask 1043456   ;;  %vm56_vm1 = vcmask 31744   ;;  %v657_v9 = vmov 0.0|0.0   ;;  %vm155_vm2 = vcmask 261120   ;;  %s836_s2 = inlined_call_operand.vmem [shape: f32[4,32], index: 2, kind: input, shape index: {}]   ;;  %s837_s0 = inlined_call_operand.vmem [shape: f32[8,4], index: 0, kind: input, shape index: {}]   ;;  %s838_s1 = inlined_call_operand.vmem [shape: f32[8,4], index: 1, kind: input, shape index: {}]   ;;  %s839_s4 = inlined_call_operand.vmem [shape: f32[32,32], index: 4, kind: input, shape index: {}]   ;;  %s840_s7 = inlined_call_operand.vmem [shape: f32[32,64], index: 7, kind: input, shape index: {}]   ;;  %s841_s3 = inlined_call_operand.vmem [shape: f32[1,32], index: 3, kind: input, shape index: {}]   ;;  %s842_s6 = inlined_call_operand.vmem [shape: f32[32,64], index: 6, kind: input, shape index: {}]   ;;  %s843_s5 = inlined_call_operand.vmem [shape: f32[1,32], index: 5, kind: input, shape index: {}]   ;;  %s844_s9 = inlined_call_operand.vmem [shape: f32[64,64], index: 9, kind: input, shape index: {}]   ;;  %s845_s8 = inlined_call_operand.vmem [shape: f32[1,64], index: 8, kind: input, shape index: {}]   ;;  %s846_s12 = inlined_call_operand.<no memory space> [shape: f32[1,1], index: 12, kind: input, shape index: {}]   ;;  %s847_s10 = inlined_call_operand.vmem [shape: f32[1,64], index: 10, kind: input, shape index: {}]   ;;  %s848_s11 = inlined_call_operand.vmem [shape: f32[1,64], index: 11, kind: input, shape index: {}]   ;;  %s849_s13 = inlined_call_operand.vmem [shape: f32[8,128], index: 13, kind: output, shape index: {}]  }
   0x1   :  { %v48_v0 = vld [vmem:[%s836_s2] sm:$0xf]  ;;  %v145_v4 = vld [vmem:[%s839_s4 + $0x8] sm:$0xff]  ;;  %v146_v6 = vld [vmem:[%s839_s4 + $0x10] sm:$0xff]  ;;  %628 = vmatprep.subr.bf16.mxu0 %v657_v9  ;;  %vm658_vm3 = vmmov 0   ;;  %v659_v29 = vmov 0.0   ;;  %v18_v57 = vstv %s846_s12 }
   0x2   :  { %v46_v1 = vld [vmem:[%s837_s0] sm:$0xff]  ;;  %563 = vmatprep.subr.msk.mxu1 %vm63_vm0, %v48_v0  ;;  %v147_v7 = vld [vmem:[%s839_s4 + $0x18] sm:$0xff]  ;;  %v244_v11 = vld [vmem:[%s840_s7 + $0x8] sm:$0xff]  ;;  %587 = vmatprep.mubr.msk.f32.mxu0 %vm658_vm3, %v659_v29  ;;  %vm417_vm4 = vcmask 523264   ;;  %19 = vst [vmem:[#allocation2] sm:$0x1] %v18_v57 }
   0x3   :  { %v47_v2 = vld [vmem:[%s838_s1] sm:$0xff]  ;;  %565 = vmatprep.mubr.msk.f32.mxu1 %vm56_vm1, %v46_v1  ;;  %564 = vmatpush3.msk.msra.mxu1 %vm63_vm0, %v48_v0  ;;  %v624_v8 = vpack.c.bf16 %v147_v7, %v146_v6  ;;  %v240_v18 = vld [vmem:[%s842_s6 + $0x8] sm:$0xff]  ;;  %v245_v23 = vld [vmem:[%s840_s7 + $0x10] sm:$0xff] }
   0x4   :  { %v144_v3 = vld [vmem:[%s839_s4] sm:$0xff]  ;;  %566 = vmatmul.mubr.msk.f32.vlgmr.msra.gmra.mrb[0].mxu1 %vm56_vm1, %v47_v2  ;;  %v246_v24 = vld [vmem:[%s840_s7 + $0x18] sm:$0xff]  ;;  %v241_v26 = vld [vmem:[%s842_s6 + $0x10] sm:$0xff]  ;;  %v660_v2 = vmov 0  }
   0x5   :  { %v620_v5 = vpack.c.bf16 %v145_v4, %v144_v3  ;;  %v243_v10 = vld [vmem:[%s840_s7] sm:$0xff]  ;;  %v632_v25 = vpack.c.bf16 %v246_v24, %v245_v23  ;;  %v242_v27 = vld [vmem:[%s842_s6 + $0x18] sm:$0xff]  ;;  %v403_v32 = vld [vmem:[%s844_s9 + $0x8] sm:$0xff]  ;;  %656 = vset.pattern.permute.xlu0 %v660_v2 }
   0x6   :  { %v629_v12 = vpack.c.bf16 %v244_v11, %v243_v10  ;;  %v521_v13 = vld [vmem:[%s841_s3] ss:$0 sm:$0xff]  ;;  %v638_v28 = vpack.c.bf16 %v242_v27, %v241_v26  ;;  %v404_v39 = vld [vmem:[%s844_s9 + $0x10] sm:$0xff]  ;;  %v405_v40 = vld [vmem:[%s844_s9 + $0x18] sm:$0xff] }
   0x7   :  { %621 = vmatprep.subr.bf16.mxu1 %v620_v5  ;;  %v239_v17 = vld [vmem:[%s842_s6] sm:$0xff]  ;;  %v644_v42 = vpack.c.bf16 %v405_v40, %v404_v39  ;;  %v407_v44 = vld [vmem:[%s844_s9 + $0x28] sm:$0xff]  ;;  %v408_v46 = vld [vmem:[%s844_s9 + $0x30] sm:$0xff] }
   0x8   :  { %623 = vmatpush3.bf16.msra.mxu1 %v620_v5  ;;  %630 = vmatpush3.bf16.msra.mxu0 %v629_v12  ;;  %v635_v21 = vpack.c.bf16 %v240_v18, %v239_v17  ;;  %v525_v30 = vld [vmem:[%s843_s5] ss:$0 sm:$0xff]  ;;  %v409_v47 = vld [vmem:[%s844_s9 + $0x38] sm:$0xff] }
   0x9   :  { %625 = vmatprep.subr.bf16.mxu1 %v624_v8  ;;  %631 = vmatprep.subr.bf16.mxu0 %v657_v9  ;;  %v402_v31 = vld [vmem:[%s844_s9] sm:$0xff]  ;;  %v650_v48 = vpack.c.bf16 %v409_v47, %v408_v46 }
   0xa   :  { %v641_v37 = vpack.c.bf16 %v403_v32, %v402_v31  ;;  %v406_v43 = vld [vmem:[%s844_s9 + $0x20] sm:$0xff] }
   0xb   :  { %v647_v45 = vpack.c.bf16 %v407_v44, %v406_v43  ;;  %v530_v51 = vld [vmem:[%s845_s8] ss:$0 sm:$0xff] }
   0xc   :  { %627 = vmatpush3.bf16.msra.mxu1 %v624_v8  ;;  %633 = vmatpush3.bf16.msra.mxu0 %v632_v25  ;;  %v531_v58 = vld [vmem:[%s847_s10] ss:$0 sm:$0xff] }
   0xd   :  { %634 = vmatprep.subr.bf16.mxu1 %v657_v9  ;;  %640 = vmatprep.subr.bf16.mxu0 %v657_v9  ;;  %v533_v62 = vld [vmem:[%s848_s11] ss:$0 sm:$0xff] }
   0xe   :  { %v534_v3 = vld [vmem:[#allocation2] ss:$0 sm:$0xff] }
  0xd7   :  { %v567_v14 = vpop.f32.mrb[0].mxu1 }
  0xd8   :  { %v139_v15 = vadd.f32 %v567_v14, %v521_v13  ;;  %v133_v16 = vpop.f32.mrb[1].mxu1 }
  0xd9   :  { %v134_v19 = vadd.f32 %v521_v13, %v133_v16 }
  0xda   :  { %v143_v22 = vmax.f32 %v139_v15, 0.0 }
  0xdb   :  { %v142_v20 = vmax.f32 %v134_v19, 0.0 }
  0xdd   :  { %576 = vmatprep.mubr.msk.f32.mxu1 %vm155_vm2, %v142_v20 }
  0xde   :  { %577 = vmatmul.mubr.msk.f32.vlgmr.msra.gmra.mrb[2].mxu1 %vm155_vm2, %v143_v22 }
  0xdf   :  { %636 = vmatpush3.bf16.msra.mxu1 %v635_v21  ;;  %598 = vmatprep.mubr.msk.f32.mxu1 %vm658_vm3, %v659_v29 }
  0xe0   :  { %637 = vmatprep.subr.bf16.mxu1 %v657_v9 }
  0xe3   :  { %639 = vmatpush3.bf16.msra.mxu1 %v638_v28 }
 0x1b1   :  { %v578_v33 = vpop.f32.mrb[2].mxu1 }
 0x1b2   :  { %v234_v34 = vadd.f32 %v578_v33, %v525_v30  ;;  %v228_v35 = vpop.f32.mrb[3].mxu1 }
 0x1b3   :  { %v229_v36 = vadd.f32 %v525_v30, %v228_v35 }
 0x1b4   :  { %v238_v38 = vmax.f32 %v234_v34, 0.0 }
 0x1b5   :  { %v237_v41 = vmax.f32 %v229_v36, 0.0 }
 0x1b6   :  { %588 = vmatmul.mubr.msk.f32.vlgmr.msra.gmra.mrb[0].mxu0 %vm155_vm2, %v238_v38 }
 0x1b7   :  { %599 = vmatmul.mubr.msk.f32.vlgmr.msra.gmra.mrb[4].mxu1 %vm155_vm2, %v237_v41  ;;  %642 = vmatpush3.bf16.msra.mxu0 %v641_v37 }
 0x1b8   :  { %643 = vmatprep.subr.bf16.mxu0 %v657_v9  ;;  %617 = vmatprep.mubr.msk.f32.mxu0 %vm658_vm3, %v659_v29 }
 0x1bb   :  { %645 = vmatpush3.bf16.msra.mxu0 %v644_v42 }
 0x1bc   :  { %646 = vmatprep.subr.bf16.mxu0 %v657_v9 }
 0x1bf   :  { %648 = vmatpush3.bf16.msra.mxu0 %v647_v45 }
 0x1c0   :  { %649 = vmatprep.subr.bf16.mxu0 %v657_v9 }
 0x1c3   :  { %651 = vmatpush3.bf16.msra.mxu0 %v650_v48 }
 0x289   :  { %v317_v49 = vpop.f32.mrb[0].mxu0 }
 0x28a   :  { %v589_v50 = vpop.f32.mrb[1].mxu0  ;;  %v390_v52 = vpop.f32.mrb[4].mxu1 }
 0x28b   :  { %v391_v53 = vadd.f32 %v390_v52, %v317_v49  ;;  %v600_v54 = vpop.f32.mrb[5].mxu1 }
 0x28d   :  { %v400_v55 = vadd.f32 %v530_v51, %v391_v53 }
 0x28f   :  { %v401_v56 = vmax.f32 %v400_v55, 0.0 }
 0x291   :  { %618 = vmatmul.mubr.msk.f32.vlgmr.msra.gmra.mrb[2].mxu0 %vm417_vm4, %v401_v56 }
 0x364   :  { %v487_v59 = vpop.f32.mrb[2].mxu0 }
 0x365   :  { %v488_v60 = vadd.f32 %v531_v58, %v487_v59  ;;  %v619_v61 = vpop.f32.mrb[3].mxu0 }
 0x367   :  { %v491_v63 = vmax.f32 %v488_v60, 0.0 }
 0x369   :  { %v500_v0 = vmul.f32 %v533_v62, %v491_v63 }
 0x36b   :  { %v501_v1 = vsel %vm417_vm4, %v500_v0, 0.0 }
 0x36c   :  { %502 = vadd.xlane.f32.xlu0 %v501_v1 }
 0x3f9   :  { %v503_v4 = vpop.xlane.xlu0 %502 }
 0x3fa   :  { %v510_v5 = vadd.f32 %v534_v3, %v503_v4 }
 0x3fc   :  { %513 = vperm.xlu0 %656, %v510_v5  }
 0x47b   :  { %v514_v6 = vpop.permute.xlu0 %513 }
 0x47c   :  { %516 = vst [vmem:[%s849_s13] sm:$0xff] %v514_v6 }

</bundles_post_ra>
